<compile_context>
chip_gen: v7x
topology: tpu7x:2x2x1
jax: 0.10.0
libtpu: 0.0.40
codegen_flags: <defaults>
</compile_context>

<pallas_src>
import collections
import functools

import jax
import jax.numpy as jnp
from jax.experimental import pallas as pl
from jax.experimental.pallas import tpu as pltpu


MLPParams = collections.namedtuple("MLPParams", ["w_first", "w_mid", "w_last", "bias"])

_OUT_PAD = 8  # sublane-aligned padding of the scalar output row


def _activation_fn(name):
    if name == "sigmoid":
        return jax.nn.sigmoid
    if name == "ReLU":
        return lambda x: jnp.maximum(x, 0.0)
    if name == "LeakyReLU":
        # PyTorch spec: nn.LeakyReLU(negative_slope=0.1)
        return lambda x: jnp.where(x >= 0.0, x, 0.1 * x)
    raise Exception("{} not an available activation".format(name))


def _round_up(x, m):
    return (x + m - 1) // m * m


def _choose_batch_tile(batch):
    """Batch tile: full-array tile for small batch, 128-row multiples otherwise."""
    if batch <= 256:
        return _round_up(batch, 8)          # grid == 1, block == full dims
    tb = 512
    # Prefer >= 4 grid steps (2 per v7x TensorCore) while keeping tiles >= 128.
    while tb > 128 and pl.cdiv(batch, tb) < 4:
        tb //= 2
    return tb


def _vmem_capacity_bytes():
    try:
        cap = getattr(pltpu.get_tpu_info(), "vmem_capacity_bytes", None)
        if cap:
            return int(cap)
    except Exception:
        pass
    return 64 << 20  # conservative: v7x per-TensorCore VMEM


def _make_kernel(n_layers, activation, has_first, has_mid, has_bias):
    act = _activation_fn(activation)
    n_mid = n_layers - 2

    def kernel(*refs):
        x_ref = refs[0]
        out_ref = refs[-1]
        pos = 1
        w_first_ref = w_mid_ref = None
        if has_first:
            w_first_ref = refs[pos]
            pos += 1
        if has_mid:
            w_mid_ref = refs[pos]
            pos += 1
        w_last_ref = refs[pos]
        pos += 1
        b_ref = refs[pos] if has_bias else None

        cdt = w_last_ref.dtype               # compute dtype (bf16 or f32)
        h = x_ref[...].astype(cdt)

        if has_first:
            # hidden layers: MXU matmul (f32 accumulate) -> activation in f32;
            # dropout(p=0.0) is the identity.
            h = act(jnp.dot(h, w_first_ref[...], preferred_element_type=jnp.float32))
            for i in range(n_mid):
                h = act(jnp.dot(h.astype(cdt), w_mid_ref[i],
                                preferred_element_type=jnp.float32))
            h = h.astype(cdt)

        # Final layer in transposed form: w_last is stored as (OUT_PAD, K) with
        # the real output weights in row 0, so contracting both last dims gives
        # a (OUT_PAD, tb) result whose row 0 is the scalar output laid out
        # lane-dense along the batch axis -> unmasked (1, tb) store.
        y_t = jax.lax.dot_general(
            w_last_ref[...], h, (((1,), (1,)), ((), ())),
            preferred_element_type=jnp.float32)
        y = y_t[0:1, :]
        if has_bias:
            y = y + b_ref[0]                 # scalar bias from SMEM
        out_ref[...] = y.astype(out_ref.dtype)

    return kernel


def prepare_params(weights, bias=None, compute_dtype=jnp.bfloat16):
    """Pack / pad / cast weights ONCE at model-load time.

    weights : tuple of [in_i, out_i] arrays (already transposed from PyTorch's
              [out, in] convention).
    bias    : optional (1,) array (only the n_layers == 1 case has a bias).
    """
    n_layers = len(weights)
    in_dim = weights[0].shape[0]

    if n_layers == 1:
        w_first = None
        w_mid = None
        k_last = in_dim
        w_last_src = weights[0]                       # [in_dim, 1]
    else:
        hidden = weights[0].shape[1]
        hid_pad = _round_up(hidden, 128)
        w_first = (jnp.zeros((in_dim, hid_pad), compute_dtype)
                   .at[:, :hidden].set(weights[0].astype(compute_dtype)))
        n_mid = n_layers - 2
        if n_mid > 0:
            w_mid = jnp.zeros((n_mid, hid_pad, hid_pad), compute_dtype)
            for i in range(n_mid):
                w = weights[1 + i]
                w_mid = w_mid.at[i, :w.shape[0], :w.shape[1]].set(
                    w.astype(compute_dtype))
        else:
            w_mid = None
        k_last = hid_pad
        w_last_src = weights[-1]                      # [hidden, 1]

    # Stored pre-transposed: row 0 of (OUT_PAD, k_last) is the real weight
    # column; zero padding guarantees padded activation lanes never leak.
    w_last = jnp.zeros((_OUT_PAD, k_last), compute_dtype)
    w_last = w_last.at[0, :w_last_src.shape[0]].set(
        w_last_src[:, 0].astype(compute_dtype))

    b = None if bias is None else jnp.reshape(bias, (1,)).astype(jnp.float32)
    return MLPParams(w_first, w_mid, w_last, b)


@functools.partial(jax.jit, static_argnames=("activation",))
def mlp_forward(x, params, *, activation="ReLU"):
    """Full MLP forward pass in one Pallas kernel. Returns [batch, 1] float32."""
    batch, in_dim = x.shape
    w_first, w_mid, w_last, bias = params
    has_first = w_first is not None
    has_mid = w_mid is not None
    has_bias = bias is not None
    n_layers = 1 if not has_first else 2 + (w_mid.shape[0] if has_mid else 0)
    hid_pad = w_first.shape[1] if has_first else in_dim
    out_pad, k_last = w_last.shape
    assert k_last == (hid_pad if has_first else in_dim), "params / x mismatch"

    tb = _choose_batch_tile(batch)
    batch_pad = _round_up(batch, tb)
    grid = (batch_pad // tb,)

    # Only row-pad the batch when it is ragged w.r.t. the tile; no lane padding
    # of x (the x block's last dim equals the full array dim).
    x_in = x
    if batch_pad != batch:
        x_in = jnp.zeros((batch_pad, in_dim), x.dtype).at[:batch].set(x)

    in_specs = [pl.BlockSpec((tb, in_dim), lambda i: (i, 0))]
    operands = [x_in]
    if has_first:
        in_specs.append(pl.BlockSpec(w_first.shape, lambda i: (0, 0)))
        operands.append(w_first)
    if has_mid:
        in_specs.append(pl.BlockSpec(w_mid.shape, lambda i: (0, 0, 0)))
        operands.append(w_mid)
    in_specs.append(pl.BlockSpec(w_last.shape, lambda i: (0, 0)))
    operands.append(w_last)
    if has_bias:
        in_specs.append(pl.BlockSpec(memory_space=pltpu.MemorySpace.SMEM))
        operands.append(bias)

    out_spec = pl.BlockSpec((1, tb), lambda i: (0, i))

    def _nbytes(a):
        return 0 if a is None else int(a.size) * a.dtype.itemsize

    w_bytes = _nbytes(w_first) + _nbytes(w_mid) + _nbytes(w_last)
    x_bytes = _nbytes(x_in)
    out_bytes = batch_pad * 4

    flops = 0
    if has_first:
        flops += 2 * batch_pad * in_dim * hid_pad
        if has_mid:
            flops += 2 * batch_pad * hid_pad * hid_pad * int(w_mid.shape[0])
    flops += 2 * batch_pad * k_last * out_pad
    transcendentals = (batch_pad * hid_pad * (n_layers - 1)
                       if (activation == "sigmoid" and has_first) else 0)

    # VMEM budget: double-buffered x/out tiles + (double-buffered) resident
    # weights + f32 intermediates, with 2x headroom; capped at 3/4 of the
    # actual chip's VMEM (v7x 64 MiB vs v5e/v6e 128 MiB).
    h_bytes = 3 * tb * max(in_dim, k_last) * 4
    vmem_need = 2 * (tb * in_dim * x_in.dtype.itemsize) + 2 * (tb * 4) \
        + 2 * w_bytes + h_bytes
    vmem_limit = int(min(max(2 * vmem_need, 8 << 20),
                         (_vmem_capacity_bytes() * 3) // 4))

    kernel = _make_kernel(n_layers, activation, has_first, has_mid, has_bias)

    out = pl.pallas_call(
        kernel,
        grid=grid,
        in_specs=in_specs,
        out_specs=out_spec,
        out_shape=jax.ShapeDtypeStruct((1, batch_pad), jnp.float32),
        compiler_params=pltpu.CompilerParams(
            dimension_semantics=("parallel",),
            vmem_limit_bytes=vmem_limit,
        ),
        cost_estimate=pl.CostEstimate(
            flops=flops,
            transcendentals=transcendentals,
            bytes_accessed=x_bytes + w_bytes + out_bytes + (4 if has_bias else 0),
        ),
    )(*operands)

    # Real result is row 0 of the (1, batch_pad) lane-dense output.
    return out[0, :batch][:, None]


def init_params(key, input_size, hidden_size, n_layers):
    """Deterministic params mirroring the PyTorch module's shapes.

    Returns (weights, bias): weights are [in, out] (pre-transposed); bias is a
    (1,)-shaped array only for the n_layers == 1 case (matches the spec).
    """
    if n_layers == 1:
        sizes = [input_size, 1]
    else:
        sizes = [input_size] + [hidden_size] * (n_layers - 1) + [1]

    weights = []
    for i in range(n_layers):
        fan_in, fan_out = sizes[i], sizes[i + 1]
        key, sub = jax.random.split(key)
        bound = 1.0 / (fan_in ** 0.5)
        w = jax.random.uniform(
            sub, (fan_in, fan_out), jnp.float32, minval=-bound, maxval=bound)
        weights.append(w)

    bias = None
    if n_layers == 1:
        key, sub = jax.random.split(key)
        bound = 1.0 / (input_size ** 0.5)
        bias = jax.random.uniform(sub, (1,), jnp.float32, minval=-bound, maxval=bound)
    return tuple(weights), bias


def reference_forward(x, weights, bias, activation):
    act = _activation_fn(activation)
    h = x
    for i in range(len(weights) - 1):
        h = act(h @ weights[i])
    y = h @ weights[-1]
    if bias is not None:
        y = y + bias
    return y


if __name__ == "__main__":
    key = jax.random.PRNGKey(0)

    # Small MLP-shaped problem: batch=8, input_size=32, hidden_size=32,
    # n_layers=3, dropout p=0.0 (identity).
    batch, input_size, hidden_size, n_layers = 8, 32, 32, 3

    key, xkey, pkey = jax.random.split(key, 3)
    x = jax.random.normal(xkey, (batch, input_size), jnp.float32)
    weights, bias = init_params(pkey, input_size, hidden_size, n_layers)

    # Weights packed / padded / cast once (load-time), not per call.
    params_f32 = prepare_params(weights, bias, compute_dtype=jnp.float32)
    params_bf16 = prepare_params(weights, bias, compute_dtype=jnp.bfloat16)

    # Multi-layer path: exercise every supported activation.
    for activation in ("ReLU", "LeakyReLU", "sigmoid"):
        ref = reference_forward(x, weights, bias, activation)

        out = jax.block_until_ready(mlp_forward(x, params_f32, activation=activation))
        assert out.shape == (batch, 1), out.shape
        assert jnp.allclose(out, ref, atol=1e-5, rtol=1e-4), (activation, "f32")

        out16 = jax.block_until_ready(mlp_forward(x, params_bf16, activation=activation))
        assert out16.shape == (batch, 1), out16.shape
        assert jnp.allclose(out16, ref, atol=5e-2, rtol=5e-2), (activation, "bf16")

    # n_layers == 1 path (single Linear with bias).
    w1, b1 = init_params(jax.random.PRNGKey(1), input_size, hidden_size, 1)
    p1 = prepare_params(w1, b1, compute_dtype=jnp.float32)
    out1 = jax.block_until_ready(mlp_forward(x, p1, activation="ReLU"))
    ref1 = reference_forward(x, w1, b1, "ReLU")
    assert out1.shape == (batch, 1)
    assert jnp.allclose(out1, ref1, atol=1e-5, rtol=1e-4), (out1, ref1)

    # n_layers == 2 path (first + last layer, no middle stack, no bias).
    w2, b2 = init_params(jax.random.PRNGKey(2), input_size, hidden_size, 2)
    p2 = prepare_params(w2, b2, compute_dtype=jnp.float32)
    out2 = jax.block_until_ready(mlp_forward(x, p2, activation="LeakyReLU"))
    ref2 = reference_forward(x, w2, b2, "LeakyReLU")
    assert out2.shape == (batch, 1)
    assert jnp.allclose(out2, ref2, atol=1e-5, rtol=1e-4), (out2, ref2)

    print("KERNEL_OK")
</pallas_src>

<mosaic_0001>
module attributes {stable_mosaic.version = 11 : i64} {
  func.func @kernel(%arg0: i32, %arg1: memref<8x32xf32, #tpu.memory_space<vmem>>, %arg2: memref<32x128xf32, #tpu.memory_space<vmem>>, %arg3: memref<1x128x128xf32, #tpu.memory_space<vmem>>, %arg4: memref<8x128xf32, #tpu.memory_space<vmem>>, %arg5: memref<1x8xf32, #tpu.memory_space<vmem>>) attributes {dimension_semantics = [#tpu.dimension_semantics<parallel>], iteration_bounds = array<i64: 1>, scalar_prefetch = 0 : i64, scratch_operands = 0 : i64, tpu.core_type = #tpu.core_type<tc>, window_params = [{transform_indices = @transform_0, window_bounds = array<i64: 8, 32>}, {pipeline_mode = #tpu.pipeline_mode<synchronous>, transform_indices = @transform_1, window_bounds = array<i64: 32, 128>}, {pipeline_mode = #tpu.pipeline_mode<synchronous>, transform_indices = @transform_2, window_bounds = array<i64: 1, 128, 128>}, {pipeline_mode = #tpu.pipeline_mode<synchronous>, transform_indices = @transform_3, window_bounds = array<i64: 8, 128>}, {transform_indices = @transform_4, window_bounds = array<i64: 1, 8>}]} {
    %c0 = arith.constant 0 : index
    %c0_0 = arith.constant 0 : index
    %0 = vector.load %arg1[%c0, %c0_0] : memref<8x32xf32, #tpu.memory_space<vmem>>, vector<8x32xf32>
    %c0_1 = arith.constant 0 : index
    %c0_2 = arith.constant 0 : index
    %1 = vector.load %arg2[%c0_1, %c0_2] : memref<32x128xf32, #tpu.memory_space<vmem>>, vector<32x128xf32>
    %cst = arith.constant dense<0.000000e+00> : vector<8x128xf32>
    %2 = tpu.matmul %0, %1, %cst {dimension_numbers = #tpu.dot_dimension_numbers<[1], [0], [0], [1], [0, 0, 1, 1], [], []>} : vector<8x32xf32>, vector<32x128xf32>, vector<8x128xf32> -> vector<8x128xf32>
    %cst_3 = arith.constant 0.000000e+00 : f32
    %3 = vector.broadcast %cst_3 : f32 to vector<8x128xf32>
    %4 = arith.maximumf %2, %3 : vector<8x128xf32>
    %c0_4 = arith.constant 0 : index
    %c0_5 = arith.constant 0 : index
    %c0_6 = arith.constant 0 : index
    %5 = vector.load %arg3[%c0_4, %c0_5, %c0_6] : memref<1x128x128xf32, #tpu.memory_space<vmem>>, vector<1x128x128xf32>
    %6 = vector.shape_cast %5 : vector<1x128x128xf32> to vector<128x128xf32>
    %cst_7 = arith.constant dense<0.000000e+00> : vector<8x128xf32>
    %7 = tpu.matmul %4, %6, %cst_7 {dimension_numbers = #tpu.dot_dimension_numbers<[1], [0], [0], [1], [0, 0, 1, 1], [], []>} : vector<8x128xf32>, vector<128x128xf32>, vector<8x128xf32> -> vector<8x128xf32>
    %cst_8 = arith.constant 0.000000e+00 : f32
    %8 = vector.broadcast %cst_8 : f32 to vector<8x128xf32>
    %9 = arith.maximumf %7, %8 : vector<8x128xf32>
    %c0_9 = arith.constant 0 : index
    %c0_10 = arith.constant 0 : index
    %10 = vector.load %arg4[%c0_9, %c0_10] : memref<8x128xf32, #tpu.memory_space<vmem>>, vector<8x128xf32>
    %cst_11 = arith.constant dense<0.000000e+00> : vector<8x8xf32>
    %11 = tpu.matmul %10, %9, %cst_11 {dimension_numbers = #tpu.dot_dimension_numbers<[1], [1], [0], [0], [0, 0, 1, 0], [], []>} : vector<8x128xf32>, vector<8x128xf32>, vector<8x8xf32> -> vector<8x8xf32>
    %12 = vector.extract_strided_slice %11 {offsets = [0, 0], sizes = [1, 8], strides = [1, 1]} : vector<8x8xf32> to vector<1x8xf32>
    %c0_12 = arith.constant 0 : index
    %c0_13 = arith.constant 0 : index
    %13 = vector.load %arg5[%c0_12, %c0_13] : memref<1x8xf32, #tpu.memory_space<vmem>>, vector<1x8xf32>
    tpu.vector_store %arg5[%c0_12, %c0_13], %12 {strides = array<i32>} : memref<1x8xf32, #tpu.memory_space<vmem>>, vector<1x8xf32>,
    return
  }
  func.func @transform_0(%arg0: i32) -> (i32, i32) {
    %c0_i32 = arith.constant 0 : i32
    %c0_i32_0 = arith.constant 0 : i32
    return %arg0, %c0_i32 : i32, i32
  }
  func.func @transform_1(%arg0: i32) -> (i32, i32) {
    %c0_i32 = arith.constant 0 : i32
    %c0_i32_0 = arith.constant 0 : i32
    %c0_i32_1 = arith.constant 0 : i32
    return %c0_i32, %c0_i32_0 : i32, i32
  }
  func.func @transform_2(%arg0: i32) -> (i32, i32, i32) {
    %c0_i32 = arith.constant 0 : i32
    %c0_i32_0 = arith.constant 0 : i32
    %c0_i32_1 = arith.constant 0 : i32
    %c0_i32_2 = arith.constant 0 : i32
    return %c0_i32, %c0_i32_0, %c0_i32_1 : i32, i32, i32
  }
  func.func @transform_3(%arg0: i32) -> (i32, i32) {
    %c0_i32 = arith.constant 0 : i32
    %c0_i32_0 = arith.constant 0 : i32
    %c0_i32_1 = arith.constant 0 : i32
    return %c0_i32, %c0_i32_0 : i32, i32
  }
  func.func @transform_4(%arg0: i32) -> (i32, i32) {
    %c0_i32 = arith.constant 0 : i32
    %c0_i32_0 = arith.constant 0 : i32
    return %c0_i32, %arg0 : i32, i32
  }
}

</mosaic_0001>

<bundles_post_ra>
// kernel: mlp_forward.1
= control target key start
LH: loop header
LB: loop body
LE: loop exit
PB: predicated region body
PF: predicated region fallthrough
CT: control target
= control target key end

     0   :  { %9 = vsyncpa [#allocation3], 0  ;;  %s616_s0 = inlined_call_operand.hbm [shape: f32[8,32], index: 0, kind: input, shape index: {}]   ;;  %s617_s1 = inlined_call_operand.hbm [shape: f32[32,128], index: 1, kind: input, shape index: {}]   ;;  %s618_s2 = inlined_call_operand.hbm [shape: f32[1,128,128], index: 2, kind: input, shape index: {}]   ;;  %s619_s3 = inlined_call_operand.vmem [shape: f32[8,128], index: 3, kind: input, shape index: {}]   ;;  %s620_s4 = inlined_call_operand.hbm [shape: f32[1,8], index: 4, kind: output, shape index: {}]  }
   0x1   :  { %10 = vsyncpa [#allocation6], 0 }
   0x2   :  { %11 = vsyncpa [#allocation4], 0  ;;  %s522_s15 = smov [#allocation5]   ;;  %s428_s19 = scalar_lea.hbm %s617_s1, 512 }
   0x3   :  { %s27_s16 = sshll.u32 %s522_s15, 4  ;;  %p429_p0 = scmp.ne.s32.totalorder %s617_s1, %s428_s19  ;;  %s28_s16 = int_to_ptr.vmem [resolvable:$true] %s27_s16 }
   0x4   :  { %p432_p1 = scmp.lt.u32.totalorder %s428_s19, %s617_s1 }
   0x6   :  { %p434_p2 = pnand %p432_p1, %p429_p0 }
   0x8   :  { %437 = shalt.err (!%p434_p2)
}
   0x9   :  { %s438_s24 = scalar_lea.vmem %s28_s16, 512  ;;  %p443_p4 = scmp.lt.s32.totalorder %s28_s16, %s28_s16 }
   0xa   :  { %p439_p3 = scmp.ne.s32.totalorder %s28_s16, %s438_s24  ;;  %p444_p5 = scmp.lt.s32.totalorder %s438_s24, %s438_s24 }
   0xc   :  { %p445_p6 = por %p444_p5, %p443_p4 }
   0xe   :  { %p446_p7 = pnand %p445_p6, %p439_p3 }
  0x10   :  { %449 = shalt.err (!%p446_p7)
}
  0x11   :  { %s523_s25 = smov 128   ;;  %s524_s26 = smov 8  }
  0x12   :  { %33 = dma.hbm_to_vmem [thread:$0]  %s617_s1, 512, %s28_s16, [#allocation6], %s523_s25, %s523_s25, %s524_s26  }
  0x13   :  { %s525_s29 = smov [#allocation2]   ;;  %s526_s5 = smov [#allocation7]  }
  0x14   :  { %s18_s30 = sshll.u32 %s525_s29, 4  ;;  %s39_s6 = sshll.u32 %s526_s5, 4  ;;  %s19_s30 = int_to_ptr.vmem [resolvable:$true] %s18_s30  ;;  %s40_s6 = int_to_ptr.vmem [resolvable:$true] %s39_s6 }
  0x15   :  { %s450_s9 = scalar_lea.hbm %s616_s0, 128 }
  0x16   :  { %p451_p8 = scmp.ne.s32.totalorder %s616_s0, %s450_s9  ;;  %p454_p9 = scmp.lt.u32.totalorder %s450_s9, %s616_s0 }
  0x18   :  { %p456_p10 = pnand %p454_p9, %p451_p8 }
  0x1a   :  { %459 = shalt.err (!%p456_p10)
}
  0x1b   :  { %s460_s1 = scalar_lea.vmem %s19_s30, 128  ;;  %p465_p12 = scmp.lt.s32.totalorder %s19_s30, %s19_s30 }
  0x1c   :  { %p461_p11 = scmp.ne.s32.totalorder %s19_s30, %s460_s1  ;;  %p466_p13 = scmp.lt.s32.totalorder %s460_s1, %s460_s1 }
  0x1e   :  { %p467_p0 = por %p466_p13, %p465_p12 }
  0x20   :  { %p468_p1 = pnand %p467_p0, %p461_p11 }
  0x22   :  { %471 = shalt.err (!%p468_p1)
}
  0x23   :  { %21 = dma.hbm_to_vmem [thread:$0]  %s616_s0, 128, %s19_s30, [#allocation3]  }
  0x24   :  { %s472_s18 = scalar_lea.hbm %s618_s2, 2048 }
  0x25   :  { %p473_p2 = scmp.ne.s32.totalorder %s618_s2, %s472_s18  ;;  %p476_p3 = scmp.lt.u32.totalorder %s472_s18, %s618_s2 }
  0x27   :  { %p478_p4 = pnand %p476_p3, %p473_p2 }
  0x29   :  { %481 = shalt.err (!%p478_p4)
}
  0x2a   :  { %s482_s23 = scalar_lea.vmem %s40_s6, 2048  ;;  %p487_p6 = scmp.lt.s32.totalorder %s40_s6, %s40_s6 }
  0x2b   :  { %p483_p5 = scmp.ne.s32.totalorder %s40_s6, %s482_s23  ;;  %p488_p7 = scmp.lt.s32.totalorder %s482_s23, %s482_s23 }
  0x2d   :  { %p489_p8 = por %p488_p7, %p487_p6 }
  0x2f   :  { %p490_p9 = pnand %p489_p8, %p483_p5 }
  0x31   :  { %493 = shalt.err (!%p490_p9)
}
  0x32   :  { %45 = dma.hbm_to_vmem [thread:$0]  %s618_s2, 2048, %s40_s6, [#allocation6], %s523_s25, %s523_s25, %s524_s26  }
  0x33   :  { %516 = dma.done.wait [#allocation3], 128  }
  0x34   :  { %517 = vsyncadd [#allocation3], 4294967168 }
  0x35   :  { %518 = dma.done.wait [#allocation6], 2560  }
  0x36   :  { %519 = vsyncadd [#allocation6], 4294964736  ;;  %v527_v0 = vmov 0.0|0.0   ;;  %vm528_vm0 = vmmov 0   ;;  %v529_v1 = vmov 0.0   ;;  %v58_v2 = vld [vmem:[#allocation5] sm:$0xff] }
  0x37   :  { %389 = vmatprep.subr.bf16.mxu0 %v527_v0  ;;  %346 = vmatprep.mubr.msk.f32.mxu0 %vm528_vm0, %v529_v1  ;;  %v59_v3 = vld [vmem:[#allocation5 + $0x8] sm:$0xff]  ;;  %v60_v4 = vld [vmem:[#allocation5 + $0x10] sm:$0xff]  ;;  %v61_v6 = vld [vmem:[#allocation5 + $0x18] sm:$0xff]  ;;  %vm62_vm1 = vcmask 261120   ;;  %s530_s26 = smov [#allocation8]   ;;  %vm295_vm2 = vcmask 57344  }
  0x38   :  { %395 = vmatprep.subr.bf16.mxu1 %v527_v0  ;;  %381 = vmatprep.mubr.msk.f32.mxu1 %vm528_vm0, %v529_v1  ;;  %v390_v5 = vpack.c.bf16 %v59_v3, %v58_v2  ;;  %v137_v7 = vld [vmem:[#allocation7] sm:$0xff]  ;;  %v138_v8 = vld [vmem:[#allocation7 + $0x8] sm:$0xff]  ;;  %v139_v9 = vld [vmem:[#allocation7 + $0x10] sm:$0xff]  ;;  %v393_v11 = vpack.c.bf16 %v61_v6, %v60_v4  ;;  %s303_s27 = sshll.u32 %s530_s26, 4  ;;  %s304_s27 = int_to_ptr.vmem [resolvable:$true] %s303_s27 }
  0x39   :  { %v140_v10 = vld [vmem:[#allocation7 + $0x18] sm:$0xff]  ;;  %v396_v12 = vpack.c.bf16 %v138_v8, %v137_v7  ;;  %v141_v14 = vld [vmem:[#allocation7 + $0x20] sm:$0xff]  ;;  %v142_v15 = vld [vmem:[#allocation7 + $0x28] sm:$0xff]  ;;  %s494_s28 = scalar_lea.vmem %s304_s27, 16  ;;  %s498_s29 = scalar_lea.vmem %s304_s27, 32 }
  0x3a   :  { %391 = vmatpush3.bf16.msra.mxu0 %v390_v5  ;;  %v399_v13 = vpack.c.bf16 %v140_v10, %v139_v9  ;;  %v57_v16 = vld [vmem:[#allocation2] sm:$0xff]  ;;  %v402_v17 = vpack.c.bf16 %v142_v15, %v141_v14  ;;  %v143_v18 = vld [vmem:[#allocation7 + $0x30] sm:$0xff]  ;;  %v145_v21 = vld [vmem:[#allocation7 + $0x40] sm:$0xff]  ;;  %p495_p10 = scmp.ne.s32.totalorder %s304_s27, %s494_s28  ;;  %p499_p11 = scmp.lt.s32.totalorder %s304_s27, %s304_s27 }
  0x3b   :  { %392 = vmatprep.subr.bf16.mxu0 %v527_v0  ;;  %397 = vmatpush3.bf16.msra.mxu1 %v396_v12  ;;  %v144_v19 = vld [vmem:[#allocation7 + $0x38] sm:$0xff]  ;;  %v146_v22 = vld [vmem:[#allocation7 + $0x48] sm:$0xff]  ;;  %v147_v24 = vld [vmem:[#allocation7 + $0x50] sm:$0xff]  ;;  %p500_p12 = scmp.lt.s32.totalorder %s498_s29, %s494_s28 }
  0x3c   :  { %398 = vmatprep.subr.bf16.mxu1 %v527_v0  ;;  %v405_v20 = vpack.c.bf16 %v144_v19, %v143_v18  ;;  %v408_v23 = vpack.c.bf16 %v146_v22, %v145_v21  ;;  %v148_v25 = vld [vmem:[#allocation7 + $0x58] sm:$0xff]  ;;  %v149_v27 = vld [vmem:[#allocation7 + $0x60] sm:$0xff]  ;;  %v150_v28 = vld [vmem:[#allocation7 + $0x68] sm:$0xff] }
  0x3d   :  { %v411_v26 = vpack.c.bf16 %v148_v25, %v147_v24  ;;  %v414_v29 = vpack.c.bf16 %v150_v28, %v149_v27  ;;  %v151_v30 = vld [vmem:[#allocation7 + $0x70] sm:$0xff]  ;;  %v152_v31 = vld [vmem:[#allocation7 + $0x78] sm:$0xff]  ;;  %p501_p13 = por %p500_p12, %p499_p11 }
  0x3e   :  { %394 = vmatpush3.bf16.msra.mxu0 %v393_v11  ;;  %v417_v32 = vpack.c.bf16 %v152_v31, %v151_v30  ;;  %v224_v39 = vld [vmem:[%s619_s3] sm:$0xff] }
  0x3f   :  { %384 = vmatprep.subr.mxu0 %v529_v1  ;;  %400 = vmatpush3.bf16.msra.mxu1 %v399_v13  ;;  %p502_p0 = pnand %p501_p13, %p495_p10 }
  0x40   :  { %401 = vmatprep.subr.bf16.mxu1 %v527_v0 }
  0x41   :  { %347 = vmatmul.mubr.msk.f32.vlgmr.msra.gmra.mrb[0].mxu0 %vm62_vm1, %v57_v16 }
  0x42   :  { %386 = vmatprep.mubr.msk.f32.mxu0 %vm528_vm0, %v529_v1 }
  0x43   :  { %403 = vmatpush3.bf16.msra.mxu1 %v402_v17 }
  0x44   :  { %404 = vmatprep.subr.bf16.mxu1 %v527_v0 }
  0x47   :  { %406 = vmatpush3.bf16.msra.mxu1 %v405_v20 }
  0x48   :  { %407 = vmatprep.subr.bf16.mxu1 %v527_v0 }
  0x4b   :  { %409 = vmatpush3.bf16.msra.mxu1 %v408_v23 }
  0x4c   :  { %410 = vmatprep.subr.bf16.mxu1 %v527_v0 }
  0x4f   :  { %412 = vmatpush3.bf16.msra.mxu1 %v411_v26 }
  0x50   :  { %413 = vmatprep.subr.bf16.mxu1 %v527_v0 }
  0x53   :  { %415 = vmatpush3.bf16.msra.mxu1 %v414_v29 }
  0x54   :  { %416 = vmatprep.subr.bf16.mxu1 %v527_v0 }
  0x57   :  { %418 = vmatpush3.bf16.msra.mxu1 %v417_v32 }
 0x114   :  { %v132_v33 = vpop.f32.mrb[0].mxu0 }
 0x115   :  { %v136_v34 = vmax.f32 %v132_v33, 0.0  ;;  %v348_v35 = vpop.f32.mrb[1].mxu0 }
 0x117   :  { %382 = vmatmul.mubr.f32.vlgmr.msra.gmra.mrb[0].mxu1 %v136_v34 }
 0x1ea   :  { %v219_v36 = vpop.f32.mrb[0].mxu1 }
 0x1eb   :  { %v223_v37 = vmax.f32 %v219_v36, 0.0  ;;  %v383_v38 = vpop.f32.mrb[1].mxu1 }
 0x1ed   :  { %385 = vmatpush3.xpose.msra.mxu0 %v223_v37 }
 0x1f0   :  { %387 = vmatmul.mubr.f32.vlgmr.msra.gmra.mrb[2].mxu0 %v224_v39 }
 0x2c3   :  { %v291_v40 = vpop.f32.mrb[2].mxu0 }
 0x2c4   :  { %v388_v41 = vpop.f32.mrb[3].mxu0  ;;  %296 = vst.msk [vmem:[#allocation8] sm:$0x1] %vm295_vm2, %v291_v40 }
 0x2c5   :  { %505 = shalt.err (!%p502_p0)
}
 0x2c6   :  { %s506_s3 = scalar_lea.hbm %s620_s4, 16 }
 0x2c7   :  { %p507_p1 = scmp.ne.s32.totalorder %s620_s4, %s506_s3  ;;  %p510_p2 = scmp.lt.u32.totalorder %s506_s3, %s620_s4 }
 0x2c9   :  { %p512_p3 = pnand %p510_p2, %p507_p1 }
 0x2cb   :  { %515 = shalt.err (!%p512_p3)
}
 0x2cc   :  { %306 = dma.vmem_to_hbm [thread:$0]  %s304_s27, 16, %s620_s4, [#allocation4]  }
 0x2cd   :  { %520 = dma.done.wait [#allocation4], 16  }
 0x2ce   :  { %521 = vsyncadd [#allocation4], 4294967280 }
 0x2cf   :  { %310 = vsyncpa [#allocation3], 1 }
 0x2d0   :  { %311 = vsyncpa [#allocation6], 1 }
 0x2d1   :  { %312 = vsyncpa [#allocation4], 1 }

</bundles_post_ra>
